<compile_context>
chip_gen: v5e
topology: v5e:2x2
jax: 0.10.0
libtpu: 0.0.40
codegen_flags: <defaults>
</compile_context>

<pallas_src>
import functools
from typing import NamedTuple

import jax
import jax.numpy as jnp
from jax.experimental import pallas as pl
from jax.experimental.pallas import tpu as pltpu


def _round_up(x, m):
    return (x + m - 1) // m * m


def _lrelu(x, slope):
    return x if slope is None else jnp.where(x >= 0, x, slope * x)


# ----------------------------------------------------------------------------
# Fused matmul + LeakyReLU (no bias): y = lrelu(x @ w, slope).
#   - single-K-tile variant: grid=(M tiles,), no scratch.
#   - multi-K-tile variant:  grid=(M tiles ["parallel"], K tiles ["arbitrary"]),
#     f32 VMEM accumulator with pl.when init/finalize.
# ----------------------------------------------------------------------------
def _mm_lrelu_kernel_noacc(x_ref, w_ref, o_ref, *, slope):
    acc = jnp.dot(x_ref[...], w_ref[...], preferred_element_type=jnp.float32)
    o_ref[...] = _lrelu(acc, slope).astype(o_ref.dtype)


def _mm_lrelu_kernel_acc(x_ref, w_ref, o_ref, acc_ref, *, slope):
    k = pl.program_id(1)

    @pl.when(k == 0)
    def _():
        acc_ref[...] = jnp.zeros_like(acc_ref)

    acc_ref[...] += jnp.dot(x_ref[...], w_ref[...],
                            preferred_element_type=jnp.float32)

    @pl.when(k == pl.num_programs(1) - 1)
    def _():
        o_ref[...] = _lrelu(acc_ref[...], slope).astype(o_ref.dtype)


def fused_matmul(x_mat, w_pad, slope, *, tm=256, tk_max=512,
                 out_dtype=jnp.bfloat16):
    """x_mat:(M,K), w_pad:(Kp,Np) bf16 (zero-padded, Np%128==0) -> (Mp,Np)."""
    x_mat = x_mat.astype(jnp.bfloat16)
    M, K = x_mat.shape
    Kp, Np = w_pad.shape
    assert Kp >= K and Np % 128 == 0

    # Pad K to the (prepared) weight K with zero columns.
    if Kp > K:
        x_mat = jnp.pad(x_mat, ((0, 0), (0, Kp - K)))
    K = Kp
    # Pad M to a multiple of the M tile (>= multiple of 8 for sublane alignment).
    Mp = _round_up(M, 8)
    TM = min(tm, Mp)
    Mp = _round_up(Mp, TM)
    if Mp > M:
        x_mat = jnp.pad(x_mat, ((0, Mp - M), (0, 0)))
    # K tiling only when K is large; otherwise a single full-K block.
    TK = K if K <= tk_max else tk_max
    assert K % TK == 0
    mt, kt = Mp // TM, K // TK

    flops = 2 * Mp * K * Np
    bytes_accessed = (Mp * K * 2 + K * Np * 2
                      + Mp * Np * jnp.dtype(out_dtype).itemsize)
    cost = pl.CostEstimate(flops=flops, transcendentals=0,
                           bytes_accessed=bytes_accessed)

    if kt == 1:
        # Single K block: no accumulator scratch, simpler epilogue.
        return pl.pallas_call(
            functools.partial(_mm_lrelu_kernel_noacc, slope=slope),
            out_shape=jax.ShapeDtypeStruct((Mp, Np), out_dtype),
            grid_spec=pltpu.PrefetchScalarGridSpec(
                num_scalar_prefetch=0,
                grid=(mt,),
                in_specs=[
                    pl.BlockSpec((TM, K), lambda m: (m, 0)),
                    pl.BlockSpec((K, Np), lambda m: (0, 0)),
                ],
                out_specs=pl.BlockSpec((TM, Np), lambda m: (m, 0)),
            ),
            compiler_params=pltpu.CompilerParams(
                dimension_semantics=("parallel",),
                vmem_limit_bytes=64 * 1024 * 1024,
            ),
            cost_estimate=cost,
        )(x_mat, w_pad)

    return pl.pallas_call(
        functools.partial(_mm_lrelu_kernel_acc, slope=slope),
        out_shape=jax.ShapeDtypeStruct((Mp, Np), out_dtype),
        grid_spec=pltpu.PrefetchScalarGridSpec(
            num_scalar_prefetch=0,
            grid=(mt, kt),
            in_specs=[
                pl.BlockSpec((TM, TK), lambda m, k: (m, k)),
                pl.BlockSpec((TK, Np), lambda m, k: (k, 0)),
            ],
            out_specs=pl.BlockSpec((TM, Np), lambda m, k: (m, 0)),
            scratch_shapes=[pltpu.VMEM((TM, Np), jnp.float32)],
        ),
        compiler_params=pltpu.CompilerParams(
            dimension_semantics=("parallel", "arbitrary"),
            vmem_limit_bytes=64 * 1024 * 1024,
        ),
        cost_estimate=cost,
    )(x_mat, w_pad)


# ----------------------------------------------------------------------------
# Fully fused Q head: q_conv (as matmul) + LeakyReLU(0.01) + three Linear layers
# (500->100->50->1) with LeakyReLU(0.01)s, in ONE kernel (weights VMEM-resident).
# ----------------------------------------------------------------------------
def _qhead_kernel(x_ref, qw_ref, w1_ref, b1_ref, w2_ref, b2_ref, w3_ref, b3_ref,
                  o_ref):
    h = jnp.dot(x_ref[...], qw_ref[...], preferred_element_type=jnp.float32)
    h = _lrelu(h, 0.01)
    h = jnp.dot(h.astype(jnp.bfloat16), w1_ref[...],
                preferred_element_type=jnp.float32) + b1_ref[...]
    h = _lrelu(h, 0.01)
    h = jnp.dot(h.astype(jnp.bfloat16), w2_ref[...],
                preferred_element_type=jnp.float32) + b2_ref[...]
    h = _lrelu(h, 0.01)
    h = jnp.dot(h.astype(jnp.bfloat16), w3_ref[...],
                preferred_element_type=jnp.float32) + b3_ref[...]
    o_ref[...] = h


def qhead_forward(x_mat, qw, w1, b1, w2, b2, w3, b3):
    """x_mat:(B,K) -> (B,) f32.  All weights pre-padded (zero lanes/rows)."""
    x_mat = x_mat.astype(jnp.bfloat16)
    B, K = x_mat.shape
    Kp, _ = qw.shape
    if Kp > K:
        x_mat = jnp.pad(x_mat, ((0, 0), (0, Kp - K)))

    full = lambda shp: pl.BlockSpec(shp, lambda: (0, 0))
    out = pl.pallas_call(
        _qhead_kernel,
        out_shape=jax.ShapeDtypeStruct((B, w3.shape[1]), jnp.float32),
        in_specs=[full(x_mat.shape), full(qw.shape), full(w1.shape),
                  full(b1.shape), full(w2.shape), full(b2.shape),
                  full(w3.shape), full(b3.shape)],
        out_specs=full((B, w3.shape[1])),
        compiler_params=pltpu.CompilerParams(
            vmem_limit_bytes=64 * 1024 * 1024),
    )(x_mat, qw, w1, b1, w2, b2, w3, b3)
    return out[:, 0]


# Fallback head (MLP only) used when q_conv weights are too big to fuse.
def _head_kernel(x_ref, w1_ref, b1_ref, w2_ref, b2_ref, w3_ref, b3_ref, o_ref):
    h = jnp.dot(x_ref[...].astype(jnp.bfloat16), w1_ref[...],
                preferred_element_type=jnp.float32) + b1_ref[...]
    h = _lrelu(h, 0.01)
    h = jnp.dot(h.astype(jnp.bfloat16), w2_ref[...],
                preferred_element_type=jnp.float32) + b2_ref[...]
    h = _lrelu(h, 0.01)
    h = jnp.dot(h.astype(jnp.bfloat16), w3_ref[...],
                preferred_element_type=jnp.float32) + b3_ref[...]
    o_ref[...] = h


def head_forward(h, w1, b1, w2, b2, w3, b3):
    B, D1 = h.shape
    full = lambda shp: pl.BlockSpec(shp, lambda: (0, 0))
    out = pl.pallas_call(
        _head_kernel,
        out_shape=jax.ShapeDtypeStruct((B, w3.shape[1]), jnp.float32),
        in_specs=[full((B, D1)), full(w1.shape), full(b1.shape),
                  full(w2.shape), full(b2.shape), full(w3.shape),
                  full(b3.shape)],
        out_specs=full((B, w3.shape[1])),
    )(h, w1, b1, w2, b2, w3, b3)
    return out[:, 0]


# ----------------------------------------------------------------------------
# Glue: im2col patch extraction (NHWC), matching PyTorch Conv2d semantics.
# ----------------------------------------------------------------------------
def im2col_nhwc(x_nhwc, kh, kw, stride, pad):
    B, H, W, C = x_nhwc.shape
    xp = jnp.pad(x_nhwc, ((0, 0), (pad, pad), (pad, pad), (0, 0)))
    Ho = (H + 2 * pad - kh) // stride + 1
    Wo = (W + 2 * pad - kw) // stride + 1
    cols = []
    for i in range(kh):
        for j in range(kw):
            cols.append(xp[:, i:i + stride * Ho:stride, j:j + stride * Wo:stride, :])
    # (B, Ho, Wo, kh*kw, C) -> (B, Ho*Wo, kh*kw*C); flat index order = ((i, j), c)
    patches = jnp.stack(cols, axis=3).reshape(B, Ho * Wo, kh * kw * C)
    return patches, Ho, Wo


# ----------------------------------------------------------------------------
# Parameter init (PyTorch layouts) + one-time prepare (transpose / pad / bf16).
# ----------------------------------------------------------------------------
class ConvCfg(NamedTuple):
    kh: int
    kw: int
    stride: int
    pad: int
    out_c: int


def init_inforq_params(key, imsize, nc, ndf):
    assert imsize % 16 == 0
    keys = iter(jax.random.split(key, 16))

    def rnd(shape, scale=0.05):
        return (scale * jax.random.normal(next(keys), shape)).astype(jnp.float32)

    params = {}
    # initial conv: nc -> ndf, k=4, s=2, p=1 (bias=False)
    params["conv_ws"] = [rnd((ndf, nc, 4, 4))]
    csize, cndf = imsize // 2, ndf
    # pyramid convs: cndf -> 2*cndf, k=4, s=2, p=1  while csize > 4
    while csize > 4:
        params["conv_ws"].append(rnd((cndf * 2, cndf, 4, 4)))
        cndf *= 2
        csize //= 2
    # Q head: conv cndf -> 500, k=4, s=1, p=0 (bias=False)
    params["q_conv_w"] = rnd((500, cndf, 4, 4))
    # Linear(500,100), Linear(100,50), Linear(50,1)  (PyTorch (out,in) layout)
    params["lin1_w"], params["lin1_b"] = rnd((100, 500)), rnd((100,))
    params["lin2_w"], params["lin2_b"] = rnd((50, 100)), rnd((50,))
    params["lin3_w"], params["lin3_b"] = rnd((1, 50)), rnd((1,))
    return params


def prepare_inforq_params(params, tk_max=512):
    """Pre-transpose, lane-pad (N -> mult of 128), and bf16-cast all weights once."""
    def prep_conv_w(w_oihw):
        O, I, kh, kw = w_oihw.shape
        K = kh * kw * I
        # (O,I,kh,kw) -> (kh,kw,I,O) -> (K,O); matches im2col ((i,j),c) patch order.
        w_mat = jnp.transpose(w_oihw, (2, 3, 1, 0)).reshape(K, O)
        Kp = K if K <= tk_max else _round_up(K, tk_max)
        Np = _round_up(O, 128)
        w_mat = jnp.pad(w_mat, ((0, Kp - K), (0, Np - O)))
        return w_mat.astype(jnp.bfloat16)

    def prep_lin(w_oi, b, k_pad, n_pad):
        o, i = w_oi.shape
        w = jnp.pad(w_oi.T, ((0, k_pad - i), (0, n_pad - o))).astype(jnp.bfloat16)
        bp = jnp.pad(b, (0, n_pad - o)).reshape(1, n_pad).astype(jnp.float32)
        return w, bp

    arrs = {
        "conv_ws": [prep_conv_w(w) for w in params["conv_ws"]],
        "q_w": prep_conv_w(params["q_conv_w"]),
    }
    q_np = arrs["q_w"].shape[1]                     # 500 -> 512 padded lanes
    arrs["w1"], arrs["b1"] = prep_lin(params["lin1_w"], params["lin1_b"], q_np, 128)
    arrs["w2"], arrs["b2"] = prep_lin(params["lin2_w"], params["lin2_b"], 128, 128)
    arrs["w3"], arrs["b3"] = prep_lin(params["lin3_w"], params["lin3_b"], 128, 128)

    cfgs = tuple(ConvCfg(4, 4, 2, 1, int(w.shape[0])) for w in params["conv_ws"])
    return arrs, cfgs


# ----------------------------------------------------------------------------
# InforQ forward.
# ----------------------------------------------------------------------------
def inforq_forward(arrs, x_nchw, cfgs):
    B = x_nchw.shape[0]
    # NCHW -> NHWC; bf16 activations (bit-identical: MXU input is bf16 anyway).
    x = jnp.transpose(x_nchw, (0, 2, 3, 1)).astype(jnp.bfloat16)

    # features: strided 4x4 convs (bias=False) + LeakyReLU(0.2)
    for w_pad, cfg in zip(arrs["conv_ws"], cfgs):
        patches, Ho, Wo = im2col_nhwc(x, cfg.kh, cfg.kw, cfg.stride, cfg.pad)
        x_mat = patches.reshape(B * Ho * Wo, -1)
        y = fused_matmul(x_mat, w_pad, slope=0.2)             # (Mp, Np) padded slab
        x = y[:B * Ho * Wo, :cfg.out_c].reshape(B, Ho, Wo, cfg.out_c)

    # Q head: Conv2d(cndf, 500, 4, 1, 0, bias=False) -> flatten -> LReLU(0.01)
    # -> Linear(500,100)+LReLU -> Linear(100,50)+LReLU -> Linear(50,1).
    patches, Ho, Wo = im2col_nhwc(x, 4, 4, 1, 0)              # Ho = Wo = 1
    x_mat = patches.reshape(B * Ho * Wo, -1)                  # (B, 16*cndf)

    if arrs["q_w"].size * 2 <= 24 * 1024 * 1024:
        # Single fused kernel for the whole head (no HBM roundtrip for hidden h).
        out = qhead_forward(x_mat, arrs["q_w"], arrs["w1"], arrs["b1"],
                            arrs["w2"], arrs["b2"], arrs["w3"], arrs["b3"])
    else:
        # Fallback for very large q_conv weights: tiled matmul + fused MLP head.
        h = fused_matmul(x_mat, arrs["q_w"], slope=0.01,
                         out_dtype=jnp.float32)[:B]
        out = head_forward(h, arrs["w1"], arrs["b1"], arrs["w2"], arrs["b2"],
                           arrs["w3"], arrs["b3"])
    return out                                                # (B,) == Reg_val.view(B)


if __name__ == "__main__":
    # Small shapes consistent with the module: imsize=16 (multiple of 16), nc=4, ndf=8.
    imsize, nc, ndf, batch = 16, 4, 8, 2

    key = jax.random.PRNGKey(0)
    pkey, xkey = jax.random.split(key)
    params = init_inforq_params(pkey, imsize, nc, ndf)
    arrs, cfgs = prepare_inforq_params(params)
    x = jax.random.normal(xkey, (batch, nc, imsize, imsize), dtype=jnp.float32)

    fwd = jax.jit(inforq_forward, static_argnums=(2,))
    out = fwd(arrs, x, cfgs)
    out = jax.block_until_ready(out)
    assert out.shape == (batch,), out.shape
    print("KERNEL_OK")
</pallas_src>

<mosaic_0001>
module attributes {stable_mosaic.version = 11 : i64} {
  func.func @_mm_lrelu_kernel_noacc(%arg0: i32, %arg1: memref<128x64xbf16, #tpu.memory_space<vmem>>, %arg2: memref<64x128xbf16, #tpu.memory_space<vmem>>, %arg3: memref<128x128xbf16, #tpu.memory_space<vmem>>) attributes {dimension_semantics = [#tpu.dimension_semantics<parallel>], iteration_bounds = array<i64: 1>, scalar_prefetch = 0 : i64, scratch_operands = 0 : i64, tpu.core_type = #tpu.core_type<tc>, window_params = [{transform_indices = @transform_0, window_bounds = array<i64: 128, 64>}, {pipeline_mode = #tpu.pipeline_mode<synchronous>, transform_indices = @transform_1, window_bounds = array<i64: 64, 128>}, {transform_indices = @transform_2, window_bounds = array<i64: 128, 128>}]} {
    %c0 = arith.constant 0 : index
    %c0_0 = arith.constant 0 : index
    %0 = vector.load %arg1[%c0, %c0_0] : memref<128x64xbf16, #tpu.memory_space<vmem>>, vector<128x64xbf16>
    %c0_1 = arith.constant 0 : index
    %c0_2 = arith.constant 0 : index
    %1 = vector.load %arg2[%c0_1, %c0_2] : memref<64x128xbf16, #tpu.memory_space<vmem>>, vector<64x128xbf16>
    %cst = arith.constant dense<0.000000e+00> : vector<128x128xf32>
    %2 = tpu.matmul %0, %1, %cst {dimension_numbers = #tpu.dot_dimension_numbers<[1], [0], [0], [1], [0, 0, 1, 1], [], []>} : vector<128x64xbf16>, vector<64x128xbf16>, vector<128x128xf32> -> vector<128x128xf32>
    %cst_3 = arith.constant 0.000000e+00 : f32
    %3 = vector.broadcast %cst_3 : f32 to vector<128x128xf32>
    %4 = arith.cmpf oge, %2, %3 : vector<128x128xf32>
    %cst_4 = arith.constant 2.000000e-01 : f32
    %5 = vector.broadcast %cst_4 : f32 to vector<128x128xf32>
    %6 = arith.mulf %5, %2 : vector<128x128xf32>
    %7 = arith.select %4, %2, %6 : vector<128x128xi1>, vector<128x128xf32>
    %8 = arith.truncf %7 : vector<128x128xf32> to vector<128x128xbf16>
    %c0_5 = arith.constant 0 : index
    %c0_6 = arith.constant 0 : index
    %9 = vector.load %arg3[%c0_5, %c0_6] : memref<128x128xbf16, #tpu.memory_space<vmem>>, vector<128x128xbf16>
    tpu.vector_store %arg3[%c0_5, %c0_6], %8 {strides = array<i32>} : memref<128x128xbf16, #tpu.memory_space<vmem>>, vector<128x128xbf16>,
    return
  }
  func.func @transform_0(%arg0: i32) -> (i32, i32) {
    %c0_i32 = arith.constant 0 : i32
    %c0_i32_0 = arith.constant 0 : i32
    return %arg0, %c0_i32 : i32, i32
  }
  func.func @transform_1(%arg0: i32) -> (i32, i32) {
    %c0_i32 = arith.constant 0 : i32
    %c0_i32_0 = arith.constant 0 : i32
    %c0_i32_1 = arith.constant 0 : i32
    return %c0_i32, %c0_i32_0 : i32, i32
  }
  func.func @transform_2(%arg0: i32) -> (i32, i32) {
    %c0_i32 = arith.constant 0 : i32
    %c0_i32_0 = arith.constant 0 : i32
    return %arg0, %c0_i32 : i32, i32
  }
}

module attributes {stable_mosaic.version = 11 : i64} {
  func.func @_mm_lrelu_kernel_noacc(%arg0: i32, %arg1: memref<32x128xbf16, #tpu.memory_space<vmem>>, %arg2: memref<128x128xbf16, #tpu.memory_space<vmem>>, %arg3: memref<32x128xbf16, #tpu.memory_space<vmem>>) attributes {dimension_semantics = [#tpu.dimension_semantics<parallel>], iteration_bounds = array<i64: 1>, scalar_prefetch = 0 : i64, scratch_operands = 0 : i64, tpu.core_type = #tpu.core_type<tc>, window_params = [{transform_indices = @transform_0, window_bounds = array<i64: 32, 128>}, {pipeline_mode = #tpu.pipeline_mode<synchronous>, transform_indices = @transform_1, window_bounds = array<i64: 128, 128>}, {transform_indices = @transform_2, window_bounds = array<i64: 32, 128>}]} {
    %c0 = arith.constant 0 : index
    %c0_0 = arith.constant 0 : index
    %0 = vector.load %arg1[%c0, %c0_0] : memref<32x128xbf16, #tpu.memory_space<vmem>>, vector<32x128xbf16>
    %c0_1 = arith.constant 0 : index
    %c0_2 = arith.constant 0 : index
    %1 = vector.load %arg2[%c0_1, %c0_2] : memref<128x128xbf16, #tpu.memory_space<vmem>>, vector<128x128xbf16>
    %cst = arith.constant dense<0.000000e+00> : vector<32x128xf32>
    %2 = tpu.matmul %0, %1, %cst {dimension_numbers = #tpu.dot_dimension_numbers<[1], [0], [0], [1], [0, 0, 1, 1], [], []>} : vector<32x128xbf16>, vector<128x128xbf16>, vector<32x128xf32> -> vector<32x128xf32>
    %cst_3 = arith.constant 0.000000e+00 : f32
    %3 = vector.broadcast %cst_3 : f32 to vector<32x128xf32>
    %4 = arith.cmpf oge, %2, %3 : vector<32x128xf32>
    %cst_4 = arith.constant 2.000000e-01 : f32
    %5 = vector.broadcast %cst_4 : f32 to vector<32x128xf32>
    %6 = arith.mulf %5, %2 : vector<32x128xf32>
    %7 = arith.select %4, %2, %6 : vector<32x128xi1>, vector<32x128xf32>
    %8 = arith.truncf %7 : vector<32x128xf32> to vector<32x128xbf16>
    %c0_5 = arith.constant 0 : index
    %c0_6 = arith.constant 0 : index
    %9 = vector.load %arg3[%c0_5, %c0_6] : memref<32x128xbf16, #tpu.memory_space<vmem>>, vector<32x128xbf16>
    tpu.vector_store %arg3[%c0_5, %c0_6], %8 {strides = array<i32>} : memref<32x128xbf16, #tpu.memory_space<vmem>>, vector<32x128xbf16>,
    return
  }
  func.func @transform_0(%arg0: i32) -> (i32, i32) {
    %c0_i32 = arith.constant 0 : i32
    %c0_i32_0 = arith.constant 0 : i32
    return %arg0, %c0_i32 : i32, i32
  }
  func.func @transform_1(%arg0: i32) -> (i32, i32) {
    %c0_i32 = arith.constant 0 : i32
    %c0_i32_0 = arith.constant 0 : i32
    %c0_i32_1 = arith.constant 0 : i32
    return %c0_i32, %c0_i32_0 : i32, i32
  }
  func.func @transform_2(%arg0: i32) -> (i32, i32) {
    %c0_i32 = arith.constant 0 : i32
    %c0_i32_0 = arith.constant 0 : i32
    return %arg0, %c0_i32 : i32, i32
  }
}

module attributes {stable_mosaic.version = 11 : i64} {
  func.func @_qhead_kernel(%arg0: memref<2x256xbf16, #tpu.memory_space<vmem>>, %arg1: memref<256x512xbf16, #tpu.memory_space<vmem>>, %arg2: memref<512x128xbf16, #tpu.memory_space<vmem>>, %arg3: memref<1x128xf32, #tpu.memory_space<vmem>>, %arg4: memref<128x128xbf16, #tpu.memory_space<vmem>>, %arg5: memref<1x128xf32, #tpu.memory_space<vmem>>, %arg6: memref<128x128xbf16, #tpu.memory_space<vmem>>, %arg7: memref<1x128xf32, #tpu.memory_space<vmem>>, %arg8: memref<2x128xf32, #tpu.memory_space<vmem>>) attributes {dimension_semantics = [], scalar_prefetch = 0 : i64, scratch_operands = 0 : i64, tpu.core_type = #tpu.core_type<tc>} {
    %c0 = arith.constant 0 : index
    %c0_0 = arith.constant 0 : index
    %0 = vector.load %arg0[%c0, %c0_0] : memref<2x256xbf16, #tpu.memory_space<vmem>>, vector<2x256xbf16>
    %c0_1 = arith.constant 0 : index
    %c0_2 = arith.constant 0 : index
    %1 = vector.load %arg1[%c0_1, %c0_2] : memref<256x512xbf16, #tpu.memory_space<vmem>>, vector<256x512xbf16>
    %cst = arith.constant dense<0.000000e+00> : vector<2x512xf32>
    %2 = tpu.matmul %0, %1, %cst {dimension_numbers = #tpu.dot_dimension_numbers<[1], [0], [0], [1], [0, 0, 1, 1], [], []>} : vector<2x256xbf16>, vector<256x512xbf16>, vector<2x512xf32> -> vector<2x512xf32>
    %cst_3 = arith.constant 0.000000e+00 : f32
    %3 = vector.broadcast %cst_3 : f32 to vector<2x512xf32>
    %4 = arith.cmpf oge, %2, %3 : vector<2x512xf32>
    %cst_4 = arith.constant 0.00999999977 : f32
    %5 = vector.broadcast %cst_4 : f32 to vector<2x512xf32>
    %6 = arith.mulf %5, %2 : vector<2x512xf32>
    %7 = arith.select %4, %2, %6 : vector<2x512xi1>, vector<2x512xf32>
    %8 = arith.truncf %7 : vector<2x512xf32> to vector<2x512xbf16>
    %c0_5 = arith.constant 0 : index
    %c0_6 = arith.constant 0 : index
    %9 = vector.load %arg2[%c0_5, %c0_6] : memref<512x128xbf16, #tpu.memory_space<vmem>>, vector<512x128xbf16>
    %cst_7 = arith.constant dense<0.000000e+00> : vector<2x128xf32>
    %10 = tpu.matmul %8, %9, %cst_7 {dimension_numbers = #tpu.dot_dimension_numbers<[1], [0], [0], [1], [0, 0, 1, 1], [], []>} : vector<2x512xbf16>, vector<512x128xbf16>, vector<2x128xf32> -> vector<2x128xf32>
    %c0_8 = arith.constant 0 : index
    %c0_9 = arith.constant 0 : index
    %11 = vector.load %arg3[%c0_8, %c0_9] : memref<1x128xf32, #tpu.memory_space<vmem>>, vector<1x128xf32>
    %12 = vector.broadcast %11 : vector<1x128xf32> to vector<2x128xf32>
    %13 = arith.addf %10, %12 : vector<2x128xf32>
    %cst_10 = arith.constant 0.000000e+00 : f32
    %14 = vector.broadcast %cst_10 : f32 to vector<2x128xf32>
    %15 = arith.cmpf oge, %13, %14 : vector<2x128xf32>
    %cst_11 = arith.constant 0.00999999977 : f32
    %16 = vector.broadcast %cst_11 : f32 to vector<2x128xf32>
    %17 = arith.mulf %16, %13 : vector<2x128xf32>
    %18 = arith.select %15, %13, %17 : vector<2x128xi1>, vector<2x128xf32>
    %19 = arith.truncf %18 : vector<2x128xf32> to vector<2x128xbf16>
    %c0_12 = arith.constant 0 : index
    %c0_13 = arith.constant 0 : index
    %20 = vector.load %arg4[%c0_12, %c0_13] : memref<128x128xbf16, #tpu.memory_space<vmem>>, vector<128x128xbf16>
    %cst_14 = arith.constant dense<0.000000e+00> : vector<2x128xf32>
    %21 = tpu.matmul %19, %20, %cst_14 {dimension_numbers = #tpu.dot_dimension_numbers<[1], [0], [0], [1], [0, 0, 1, 1], [], []>} : vector<2x128xbf16>, vector<128x128xbf16>, vector<2x128xf32> -> vector<2x128xf32>
    %c0_15 = arith.constant 0 : index
    %c0_16 = arith.constant 0 : index
    %22 = vector.load %arg5[%c0_15, %c0_16] : memref<1x128xf32, #tpu.memory_space<vmem>>, vector<1x128xf32>
    %23 = vector.broadcast %22 : vector<1x128xf32> to vector<2x128xf32>
    %24 = arith.addf %21, %23 : vector<2x128xf32>
    %cst_17 = arith.constant 0.000000e+00 : f32
    %25 = vector.broadcast %cst_17 : f32 to vector<2x128xf32>
    %26 = arith.cmpf oge, %24, %25 : vector<2x128xf32>
    %cst_18 = arith.constant 0.00999999977 : f32
    %27 = vector.broadcast %cst_18 : f32 to vector<2x128xf32>
    %28 = arith.mulf %27, %24 : vector<2x128xf32>
    %29 = arith.select %26, %24, %28 : vector<2x128xi1>, vector<2x128xf32>
    %30 = arith.truncf %29 : vector<2x128xf32> to vector<2x128xbf16>
    %c0_19 = arith.constant 0 : index
    %c0_20 = arith.constant 0 : index
    %31 = vector.load %arg6[%c0_19, %c0_20] : memref<128x128xbf16, #tpu.memory_space<vmem>>, vector<128x128xbf16>
    %cst_21 = arith.constant dense<0.000000e+00> : vector<2x128xf32>
    %32 = tpu.matmul %30, %31, %cst_21 {dimension_numbers = #tpu.dot_dimension_numbers<[1], [0], [0], [1], [0, 0, 1, 1], [], []>} : vector<2x128xbf16>, vector<128x128xbf16>, vector<2x128xf32> -> vector<2x128xf32>
    %c0_22 = arith.constant 0 : index
    %c0_23 = arith.constant 0 : index
    %33 = vector.load %arg7[%c0_22, %c0_23] : memref<1x128xf32, #tpu.memory_space<vmem>>, vector<1x128xf32>
    %34 = vector.broadcast %33 : vector<1x128xf32> to vector<2x128xf32>
    %35 = arith.addf %32, %34 : vector<2x128xf32>
    %c0_24 = arith.constant 0 : index
    %c0_25 = arith.constant 0 : index
    %36 = vector.load %arg8[%c0_24, %c0_25] : memref<2x128xf32, #tpu.memory_space<vmem>>, vector<2x128xf32>
    tpu.vector_store %arg8[%c0_24, %c0_25], %35 {strides = array<i32>} : memref<2x128xf32, #tpu.memory_space<vmem>>, vector<2x128xf32>,
    return
  }
}

</mosaic_0001>

<bundles_post_ra>
// kernel: inforq_forward.3
= control target key start
LH: loop header
LB: loop body
LE: loop exit
PB: predicated region body
PF: predicated region fallthrough
CT: control target
= control target key end

     0   :  { %vm100_vm0 = vcmask 523264   ;;  %s468_s1 = inlined_call_operand.vmem [shape: bf16[64,128], index: 1, kind: input, shape index: {}]   ;;  %s469_s0 = inlined_call_operand.vmem [shape: bf16[128,64], index: 0, kind: input, shape index: {}]   ;;  %s470_s2 = inlined_call_operand.vmem [shape: bf16[128,128], index: 2, kind: output, shape index: {}]  }
   0x1   :  { %v325_v0 = vld [vmem:[%s468_s1 + $0x18] sm:$0xff]  ;;  %v324_v1 = vld [vmem:[%s468_s1 + $0x10] sm:$0xff]  ;;  %v323_v2 = vld [vmem:[%s468_s1 + $0x8] sm:$0xff] }
   0x2   :  { %129 = vmatpush.bf16.msra.mxu0 %v325_v0  ;;  %373 = vmatpush.bf16.msra.mxu1 %v325_v0  ;;  %v322_v3 = vld [vmem:[%s468_s1] sm:$0xff]  ;;  %v316_v5 = vld [vmem:[%s469_s0 + $0x10] sm:$0xff]  ;;  %v315_v8 = vld [vmem:[%s469_s0 + $0x8] sm:$0xff] }
   0x3   :  { %374 = vmatpush.bf16.msra.mxu2 %v325_v0  ;;  %375 = vmatpush.bf16.msra.mxu3 %v325_v0  ;;  %v314_v4 = vld [vmem:[%s469_s0] sm:$0xff]  ;;  %v320_v7 = vld [vmem:[%s469_s0 + $0x30] sm:$0xff]  ;;  %v317_v9 = vld [vmem:[%s469_s0 + $0x18] sm:$0xff] }
   0x4   :  { %v318_v6 = vld [vmem:[%s469_s0 + $0x20] sm:$0xff]  ;;  %v319_v10 = vld [vmem:[%s469_s0 + $0x28] sm:$0xff]  ;;  %v321_v11 = vld [vmem:[%s469_s0 + $0x38] sm:$0xff] }
   0x6   :  { %130 = vmatpush.bf16.msra.mxu0 %v324_v1  ;;  %376 = vmatpush.bf16.msra.mxu1 %v324_v1 }
   0x7   :  { %377 = vmatpush.bf16.msra.mxu2 %v324_v1  ;;  %378 = vmatpush.bf16.msra.mxu3 %v324_v1 }
   0xa   :  { %131 = vmatpush.bf16.msra.mxu0 %v323_v2  ;;  %379 = vmatpush.bf16.msra.mxu1 %v323_v2 }
   0xb   :  { %380 = vmatpush.bf16.msra.mxu2 %v323_v2  ;;  %381 = vmatpush.bf16.msra.mxu3 %v323_v2 }
   0xe   :  { %132 = vmatpush.bf16.msra.mxu0 %v322_v3  ;;  %382 = vmatpush.bf16.msra.mxu1 %v322_v3 }
   0xf   :  { %383 = vmatpush.bf16.msra.mxu2 %v322_v3  ;;  %384 = vmatpush.bf16.msra.mxu3 %v322_v3 }
  0x11   :  { %306 = vmatmul.msk.bf16.vlgmr.msra.gmra.mxu0 %vm100_vm0, %v314_v4  ;;  %308 = vmatmul.msk.bf16.vlgmr.msra.gmra.mxu1 %vm100_vm0, %v316_v5 }
  0x12   :  { %310 = vmatmul.msk.bf16.vlgmr.msra.gmra.mxu2 %vm100_vm0, %v318_v6  ;;  %312 = vmatmul.msk.bf16.vlgmr.msra.gmra.mxu3 %vm100_vm0, %v320_v7 }
  0x21   :  { %307 = vmatmul.msk.bf16.gmra.mxu0 %vm100_vm0, %v315_v8  ;;  %309 = vmatmul.msk.bf16.gmra.mxu1 %vm100_vm0, %v317_v9 }
  0x22   :  { %311 = vmatmul.msk.bf16.gmra.mxu2 %vm100_vm0, %v319_v10  ;;  %313 = vmatmul.msk.bf16.gmra.mxu3 %vm100_vm0, %v321_v11 }
  0x8e   :  { %v134_v12 = vpop.f32.mrf.mxu0  ;;  %v144_v13 = vpop.f32.mrf.mxu1 }
  0x8f   :  { %v190_v14 = vmul.f32 0.2, %v134_v12  ;;  %v194_v15 = vmul.f32 0.2, %v144_v13  ;;  %vm174_vm1 = vcmp.ge.f32.partialorder %v134_v12, 0.0  ;;  %vm178_vm2 = vcmp.ge.f32.partialorder %v144_v13, 0.0 }
  0x91   :  { %v206_v22 = vsel %vm174_vm1, %v134_v12, %v190_v14  ;;  %v210_v23 = vsel %vm178_vm2, %v144_v13, %v194_v15 }
  0x95   :  { %v154_v16 = vpop.f32.mrf.mxu2  ;;  %v164_v17 = vpop.f32.mrf.mxu3 }
  0x96   :  { %v136_v18 = vpop.f32.mrf.mxu0  ;;  %v146_v19 = vpop.f32.mrf.mxu1  ;;  %v198_v28 = vmul.f32 0.2, %v154_v16  ;;  %v202_v29 = vmul.f32 0.2, %v164_v17  ;;  %vm182_vm5 = vcmp.ge.f32.partialorder %v154_v16, 0.0  ;;  %vm186_vm6 = vcmp.ge.f32.partialorder %v164_v17, 0.0 }
  0x97   :  { %vm175_vm3 = vcmp.ge.f32.partialorder %v136_v18, 0.0  ;;  %v191_v20 = vmul.f32 0.2, %v136_v18  ;;  %vm179_vm4 = vcmp.ge.f32.partialorder %v146_v19, 0.0  ;;  %v195_v21 = vmul.f32 0.2, %v146_v19 }
  0x98   :  { %v214_v36 = vsel %vm182_vm5, %v154_v16, %v198_v28  ;;  %v218_v37 = vsel %vm186_vm6, %v164_v17, %v202_v29 }
  0x99   :  { %v207_v24 = vsel %vm175_vm3, %v136_v18, %v191_v20  ;;  %v211_v25 = vsel %vm179_vm4, %v146_v19, %v195_v21 }
  0x9a   :  { %v329_v26 = vpack.c.bf16 %v207_v24, %v206_v22  ;;  %v339_v27 = vpack.c.bf16 %v211_v25, %v210_v23 }
  0x9c   :  { %330 = vst [vmem:[%s470_s2] sm:$0xff] %v329_v26  }
  0x9d   :  { %367 = vst [vmem:[%s470_s2 + $0x10] sm:$0xff] %v339_v27   ;;  %v156_v30 = vpop.f32.mrf.mxu2  ;;  %v166_v31 = vpop.f32.mrf.mxu3 }
  0x9e   :  { %vm183_vm7 = vcmp.ge.f32.partialorder %v156_v30, 0.0  ;;  %v199_v32 = vmul.f32 0.2, %v156_v30  ;;  %vm187_vm8 = vcmp.ge.f32.partialorder %v166_v31, 0.0  ;;  %v203_v33 = vmul.f32 0.2, %v166_v31  ;;  %v139_v34 = vpop.f32.mrf.mxu0  ;;  %v149_v35 = vpop.f32.mrf.mxu1 }
  0x9f   :  { %v192_v42 = vmul.f32 0.2, %v139_v34  ;;  %v196_v43 = vmul.f32 0.2, %v149_v35  ;;  %vm176_vm9 = vcmp.ge.f32.partialorder %v139_v34, 0.0  ;;  %vm180_vm10 = vcmp.ge.f32.partialorder %v149_v35, 0.0 }
  0xa0   :  { %v215_v38 = vsel %vm183_vm7, %v156_v30, %v199_v32  ;;  %v219_v39 = vsel %vm187_vm8, %v166_v31, %v203_v33 }
  0xa1   :  { %v349_v40 = vpack.c.bf16 %v215_v38, %v214_v36  ;;  %v359_v41 = vpack.c.bf16 %v219_v39, %v218_v37  ;;  %v208_v50 = vsel %vm176_vm9, %v139_v34, %v192_v42  ;;  %v212_v51 = vsel %vm180_vm10, %v149_v35, %v196_v43 }
  0xa3   :  { %369 = vst [vmem:[%s470_s2 + $0x20] sm:$0xff] %v349_v40  }
  0xa4   :  { %371 = vst [vmem:[%s470_s2 + $0x30] sm:$0xff] %v359_v41  }
  0xa5   :  { %v159_v44 = vpop.f32.mrf.mxu2  ;;  %v169_v45 = vpop.f32.mrf.mxu3 }
  0xa6   :  { %v141_v46 = vpop.f32.mrf.mxu0  ;;  %v151_v47 = vpop.f32.mrf.mxu1  ;;  %v200_v56 = vmul.f32 0.2, %v159_v44  ;;  %v204_v57 = vmul.f32 0.2, %v169_v45  ;;  %vm184_vm13 = vcmp.ge.f32.partialorder %v159_v44, 0.0  ;;  %vm188_vm14 = vcmp.ge.f32.partialorder %v169_v45, 0.0 }
  0xa7   :  { %vm177_vm11 = vcmp.ge.f32.partialorder %v141_v46, 0.0  ;;  %v193_v48 = vmul.f32 0.2, %v141_v46  ;;  %vm181_vm12 = vcmp.ge.f32.partialorder %v151_v47, 0.0  ;;  %v197_v49 = vmul.f32 0.2, %v151_v47 }
  0xa8   :  { %v216_v62 = vsel %vm184_vm13, %v159_v44, %v200_v56  ;;  %v220_v63 = vsel %vm188_vm14, %v169_v45, %v204_v57 }
  0xa9   :  { %v209_v52 = vsel %vm177_vm11, %v141_v46, %v193_v48  ;;  %v213_v53 = vsel %vm181_vm12, %v151_v47, %v197_v49 }
  0xaa   :  { %v334_v54 = vpack.c.bf16 %v209_v52, %v208_v50  ;;  %v344_v55 = vpack.c.bf16 %v213_v53, %v212_v51 }
  0xac   :  { %366 = vst [vmem:[%s470_s2 + $0x8] sm:$0xff] %v334_v54  }
  0xad   :  { %368 = vst [vmem:[%s470_s2 + $0x18] sm:$0xff] %v344_v55   ;;  %v161_v58 = vpop.f32.mrf.mxu2  ;;  %v171_v59 = vpop.f32.mrf.mxu3 }
  0xae   :  { %vm185_vm15 = vcmp.ge.f32.partialorder %v161_v58, 0.0  ;;  %v201_v60 = vmul.f32 0.2, %v161_v58  ;;  %vm189_vm0 = vcmp.ge.f32.partialorder %v171_v59, 0.0  ;;  %v205_v61 = vmul.f32 0.2, %v171_v59 }
  0xb0   :  { %v217_v0 = vsel %vm185_vm15, %v161_v58, %v201_v60  ;;  %v221_v1 = vsel %vm189_vm0, %v171_v59, %v205_v61 }
  0xb1   :  { %v354_v2 = vpack.c.bf16 %v217_v0, %v216_v62  ;;  %v364_v3 = vpack.c.bf16 %v221_v1, %v220_v63 }
  0xb3   :  { %370 = vst [vmem:[%s470_s2 + $0x28] sm:$0xff] %v354_v2  }
  0xb4   :  { %372 = vst [vmem:[%s470_s2 + $0x38] sm:$0xff] %v364_v3  }

// kernel: inforq_forward.4
= control target key start
LH: loop header
LB: loop body
LE: loop exit
PB: predicated region body
PF: predicated region fallthrough
CT: control target
= control target key end

     0   :  { %s254_s1 = inlined_call_operand.vmem [shape: bf16[128,128], index: 1, kind: input, shape index: {}]   ;;  %s255_s0 = inlined_call_operand.vmem [shape: bf16[32,128], index: 0, kind: input, shape index: {}]   ;;  %s256_s2 = inlined_call_operand.vmem [shape: bf16[32,128], index: 2, kind: output, shape index: {}]  }
   0x1   :  { %v183_v0 = vld [vmem:[%s254_s1 + $0x38] sm:$0xff]  ;;  %v182_v1 = vld [vmem:[%s254_s1 + $0x30] sm:$0xff]  ;;  %v181_v2 = vld [vmem:[%s254_s1 + $0x28] sm:$0xff] }
   0x2   :  { %91 = vmatpush.bf16.msra.mxu0 %v183_v0  ;;  %195 = vmatpush.bf16.msra.mxu1 %v183_v0  ;;  %v180_v3 = vld [vmem:[%s254_s1 + $0x20] sm:$0xff]  ;;  %v179_v4 = vld [vmem:[%s254_s1 + $0x18] sm:$0xff]  ;;  %v178_v5 = vld [vmem:[%s254_s1 + $0x10] sm:$0xff] }
   0x3   :  { %v177_v6 = vld [vmem:[%s254_s1 + $0x8] sm:$0xff]  ;;  %v176_v7 = vld [vmem:[%s254_s1] sm:$0xff] }
   0x4   :  { %v174_v8 = vld [vmem:[%s255_s0] sm:$0xff]  ;;  %v175_v9 = vld [vmem:[%s255_s0 + $0x8] sm:$0xff] }
   0x6   :  { %92 = vmatpush.bf16.msra.mxu0 %v182_v1  ;;  %196 = vmatpush.bf16.msra.mxu1 %v182_v1 }
   0xa   :  { %93 = vmatpush.bf16.msra.mxu0 %v181_v2  ;;  %197 = vmatpush.bf16.msra.mxu1 %v181_v2 }
   0xe   :  { %94 = vmatpush.bf16.msra.mxu0 %v180_v3  ;;  %198 = vmatpush.bf16.msra.mxu1 %v180_v3 }
  0x12   :  { %95 = vmatpush.bf16.msra.mxu0 %v179_v4  ;;  %199 = vmatpush.bf16.msra.mxu1 %v179_v4 }
  0x16   :  { %96 = vmatpush.bf16.msra.mxu0 %v178_v5  ;;  %200 = vmatpush.bf16.msra.mxu1 %v178_v5 }
  0x1a   :  { %97 = vmatpush.bf16.msra.mxu0 %v177_v6  ;;  %201 = vmatpush.bf16.msra.mxu1 %v177_v6 }
  0x1e   :  { %98 = vmatpush.bf16.msra.mxu0 %v176_v7  ;;  %202 = vmatpush.bf16.msra.mxu1 %v176_v7 }
  0x21   :  { %99 = vmatmul.bf16.vlgmr.msra.gmra.mxu0 %v174_v8  ;;  %104 = vmatmul.bf16.vlgmr.msra.gmra.mxu1 %v175_v9 }
  0x9e   :  { %v100_v10 = vpop.f32.mrf.mxu0  ;;  %v105_v11 = vpop.f32.mrf.mxu1 }
  0x9f   :  { %v114_v12 = vmul.f32 0.2, %v100_v10  ;;  %v116_v13 = vmul.f32 0.2, %v105_v11  ;;  %vm110_vm0 = vcmp.ge.f32.partialorder %v100_v10, 0.0  ;;  %vm112_vm1 = vcmp.ge.f32.partialorder %v105_v11, 0.0 }
  0xa1   :  { %v118_v18 = vsel %vm110_vm0, %v100_v10, %v114_v12  ;;  %v120_v19 = vsel %vm112_vm1, %v105_v11, %v116_v13 }
  0xa6   :  { %v102_v14 = vpop.f32.mrf.mxu0  ;;  %v107_v15 = vpop.f32.mrf.mxu1 }
  0xa7   :  { %vm111_vm2 = vcmp.ge.f32.partialorder %v102_v14, 0.0  ;;  %v115_v16 = vmul.f32 0.2, %v102_v14  ;;  %vm113_vm3 = vcmp.ge.f32.partialorder %v107_v15, 0.0  ;;  %v117_v17 = vmul.f32 0.2, %v107_v15 }
  0xa9   :  { %v119_v20 = vsel %vm111_vm2, %v102_v14, %v115_v16  ;;  %v121_v21 = vsel %vm113_vm3, %v107_v15, %v117_v17 }
  0xaa   :  { %v187_v22 = vpack.c.bf16 %v119_v20, %v118_v18  ;;  %v192_v23 = vpack.c.bf16 %v121_v21, %v120_v19 }
  0xac   :  { %188 = vst [vmem:[%s256_s2] sm:$0xff] %v187_v22  }
  0xad   :  { %194 = vst [vmem:[%s256_s2 + $0x8] sm:$0xff] %v192_v23  }

// kernel: inforq_forward.5
= control target key start
LH: loop header
LB: loop body
LE: loop exit
PB: predicated region body
PF: predicated region fallthrough
CT: control target
= control target key end

     0   :  { %s2190_s1 = inlined_call_operand.vmem [shape: bf16[256,512], index: 1, kind: input, shape index: {}]   ;;  %s2191_s0 = inlined_call_operand.vmem [shape: bf16[2,256], index: 0, kind: input, shape index: {}]   ;;  %s2192_s2 = inlined_call_operand.vmem [shape: bf16[512,128], index: 2, kind: input, shape index: {}]   ;;  %s2193_s3 = inlined_call_operand.vmem [shape: f32[1,128], index: 3, kind: input, shape index: {}]   ;;  %s2194_s5 = inlined_call_operand.vmem [shape: f32[1,128], index: 5, kind: input, shape index: {}]   ;;  %s2195_s4 = inlined_call_operand.vmem [shape: bf16[128,128], index: 4, kind: input, shape index: {}]   ;;  %s2196_s6 = inlined_call_operand.vmem [shape: bf16[128,128], index: 6, kind: input, shape index: {}]   ;;  %s2197_s7 = inlined_call_operand.vmem [shape: f32[1,128], index: 7, kind: input, shape index: {}]   ;;  %s2198_s8 = inlined_call_operand.vmem [shape: f32[2,128], index: 8, kind: output, shape index: {}]  }
   0x1   :  { %v1141_v0 = vld [vmem:[%s2190_s1 + $0xe0] sm:$0xf]  ;;  %v1505_v1 = vld [vmem:[%s2190_s1 + $0xec] sm:$0xf0]  ;;  %v1503_v5 = vld [vmem:[%s2190_s1 + $0xe4] sm:$0xf] }
   0x2   :  { %v1269_v2 = vld [vmem:[%s2190_s1 + $0x1e0] sm:$0xf]  ;;  %v1142_v3 = vor.u32 %v1505_v1, %v1141_v0  ;;  %v1537_v4 = vld [vmem:[%s2190_s1 + $0x1ec] sm:$0xf0]  ;;  %v1143_v6 = vld [vmem:[%s2190_s1 + $0xf0] sm:$0xf0] }
   0x3   :  { %v1270_v7 = vor.u32 %v1537_v4, %v1269_v2  ;;  %v1146_v8 = vor.u32 %v1503_v5, %v1143_v6  ;;  %v1535_v9 = vld [vmem:[%s2190_s1 + $0x1e4] sm:$0xf]  ;;  %v1271_v10 = vld [vmem:[%s2190_s1 + $0x1f0] sm:$0xf0]  ;;  %v1125_v11 = vld [vmem:[%s2190_s1 + $0xc0] sm:$0xf] }
   0x4   :  { %420 = vmatpush.bf16.msra.mxu0 %v1142_v3  ;;  %v1274_v12 = vor.u32 %v1535_v9, %v1271_v10  ;;  %v1501_v13 = vld [vmem:[%s2190_s1 + $0xcc] sm:$0xf0]  ;;  %v1253_v14 = vld [vmem:[%s2190_s1 + $0x1c0] sm:$0xf]  ;;  %v1499_v18 = vld [vmem:[%s2190_s1 + $0xc4] sm:$0xf] }
   0x5   :  { %v1533_v15 = vld [vmem:[%s2190_s1 + $0x1cc] sm:$0xf0]  ;;  %433 = vmatpush.bf16.msra.mxu1 %v1270_v7  ;;  %446 = vmatpush.bf16.msra.mxu2 %v1146_v8  ;;  %v1126_v16 = vor.u32 %v1501_v13, %v1125_v11  ;;  %v1127_v19 = vld [vmem:[%s2190_s1 + $0xd0] sm:$0xf0]  ;;  %v1531_v20 = vld [vmem:[%s2190_s1 + $0x1c4] sm:$0xf] }
   0x6   :  { %v1254_v17 = vor.u32 %v1533_v15, %v1253_v14  ;;  %459 = vmatpush.bf16.msra.mxu3 %v1274_v12  ;;  %v1130_v21 = vor.u32 %v1499_v18, %v1127_v19  ;;  %v1255_v22 = vld [vmem:[%s2190_s1 + $0x1d0] sm:$0xf0]  ;;  %v1109_v23 = vld [vmem:[%s2190_s1 + $0xa0] sm:$0xf]  ;;  %v1497_v24 = vld [vmem:[%s2190_s1 + $0xac] sm:$0xf0] }
   0x7   :  { %v1258_v25 = vor.u32 %v1531_v20, %v1255_v22  ;;  %v1237_v26 = vld [vmem:[%s2190_s1 + $0x1a0] sm:$0xf]  ;;  %v1529_v27 = vld [vmem:[%s2190_s1 + $0x1ac] sm:$0xf0]  ;;  %v1495_v28 = vld [vmem:[%s2190_s1 + $0xa4] sm:$0xf]  ;;  %v1110_v29 = vor.u32 %v1497_v24, %v1109_v23 }
   0x8   :  { %421 = vmatpush.bf16.msra.mxu0 %v1126_v16  ;;  %v1111_v30 = vld [vmem:[%s2190_s1 + $0xb0] sm:$0xf0]  ;;  %v1527_v31 = vld [vmem:[%s2190_s1 + $0x1a4] sm:$0xf]  ;;  %v1238_v33 = vor.u32 %v1529_v27, %v1237_v26  ;;  %v1093_v35 = vld [vmem:[%s2190_s1 + $0x80] sm:$0xf] }
   0x9   :  { %v1239_v32 = vld [vmem:[%s2190_s1 + $0x1b0] sm:$0xf0]  ;;  %434 = vmatpush.bf16.msra.mxu1 %v1254_v17  ;;  %447 = vmatpush.bf16.msra.mxu2 %v1130_v21  ;;  %v1114_v34 = vor.u32 %v1495_v28, %v1111_v30  ;;  %v1493_v36 = vld [vmem:[%s2190_s1 + $0x8c] sm:$0xf0]  ;;  %v1221_v37 = vld [vmem:[%s2190_s1 + $0x180] sm:$0xf] }
   0xa   :  { %460 = vmatpush.bf16.msra.mxu3 %v1258_v25  ;;  %v1242_v38 = vor.u32 %v1527_v31, %v1239_v32  ;;  %v1525_v39 = vld [vmem:[%s2190_s1 + $0x18c] sm:$0xf0]  ;;  %v1491_v40 = vld [vmem:[%s2190_s1 + $0x84] sm:$0xf]  ;;  %v1095_v41 = vld [vmem:[%s2190_s1 + $0x90] sm:$0xf0]  ;;  %v1094_v44 = vor.u32 %v1493_v36, %v1093_v35 }
   0xb   :  { %v1523_v42 = vld [vmem:[%s2190_s1 + $0x184] sm:$0xf]  ;;  %v1223_v43 = vld [vmem:[%s2190_s1 + $0x190] sm:$0xf0]  ;;  %v1222_v45 = vor.u32 %v1525_v39, %v1221_v37  ;;  %v1098_v46 = vor.u32 %v1491_v40, %v1095_v41  ;;  %v1077_v47 = vld [vmem:[%s2190_s1 + $0x60] sm:$0xf] }
   0xc   :  { %422 = vmatpush.bf16.msra.mxu0 %v1110_v29  ;;  %v1489_v48 = vld [vmem:[%s2190_s1 + $0x6c] sm:$0xf0]  ;;  %v1205_v49 = vld [vmem:[%s2190_s1 + $0x160] sm:$0xf]  ;;  %v1226_v50 = vor.u32 %v1523_v42, %v1223_v43  ;;  %v1487_v52 = vld [vmem:[%s2190_s1 + $0x64] sm:$0xf] }
   0xd   :  { %435 = vmatpush.bf16.msra.mxu1 %v1238_v33  ;;  %448 = vmatpush.bf16.msra.mxu2 %v1114_v34  ;;  %v1521_v51 = vld [vmem:[%s2190_s1 + $0x16c] sm:$0xf0]  ;;  %v1079_v53 = vld [vmem:[%s2190_s1 + $0x70] sm:$0xf0]  ;;  %v1519_v54 = vld [vmem:[%s2190_s1 + $0x164] sm:$0xf]  ;;  %v1078_v56 = vor.u32 %v1489_v48, %v1077_v47 }
   0xe   :  { %461 = vmatpush.bf16.msra.mxu3 %v1242_v38  ;;  %v1207_v55 = vld [vmem:[%s2190_s1 + $0x170] sm:$0xf0]  ;;  %v1206_v57 = vor.u32 %v1521_v51, %v1205_v49  ;;  %v1082_v58 = vor.u32 %v1487_v52, %v1079_v53  ;;  %v1061_v59 = vld [vmem:[%s2190_s1 + $0x40] sm:$0xf]  ;;  %v1485_v60 = vld [vmem:[%s2190_s1 + $0x4c] sm:$0xf0] }
   0xf   :  { %v1189_v61 = vld [vmem:[%s2190_s1 + $0x140] sm:$0xf]  ;;  %v1210_v62 = vor.u32 %v1519_v54, %v1207_v55  ;;  %v1517_v63 = vld [vmem:[%s2190_s1 + $0x14c] sm:$0xf0]  ;;  %v1483_v0 = vld [vmem:[%s2190_s1 + $0x44] sm:$0xf]  ;;  %v1062_v4 = vor.u32 %v1485_v60, %v1061_v59 }
  0x10   :  { %423 = vmatpush.bf16.msra.mxu0 %v1094_v44  ;;  %v1063_v1 = vld [vmem:[%s2190_s1 + $0x50] sm:$0xf0]  ;;  %v1515_v2 = vld [vmem:[%s2190_s1 + $0x144] sm:$0xf]  ;;  %v1190_v5 = vor.u32 %v1517_v63, %v1189_v61  ;;  %v1045_v7 = vld [vmem:[%s2190_s1 + $0x20] sm:$0xf] }
  0x11   :  { %436 = vmatpush.bf16.msra.mxu1 %v1222_v45  ;;  %449 = vmatpush.bf16.msra.mxu2 %v1098_v46  ;;  %v1191_v3 = vld [vmem:[%s2190_s1 + $0x150] sm:$0xf0]  ;;  %v1066_v6 = vor.u32 %v1483_v0, %v1063_v1  ;;  %v1481_v8 = vld [vmem:[%s2190_s1 + $0x2c] sm:$0xf0]  ;;  %v1173_v9 = vld [vmem:[%s2190_s1 + $0x120] sm:$0xf] }
  0x12   :  { %462 = vmatpush.bf16.msra.mxu3 %v1226_v50  ;;  %v1194_v10 = vor.u32 %v1515_v2, %v1191_v3  ;;  %v1513_v11 = vld [vmem:[%s2190_s1 + $0x12c] sm:$0xf0]  ;;  %v1479_v12 = vld [vmem:[%s2190_s1 + $0x24] sm:$0xf]  ;;  %v1047_v13 = vld [vmem:[%s2190_s1 + $0x30] sm:$0xf0]  ;;  %v1046_v17 = vor.u32 %v1481_v8, %v1045_v7 }
  0x13   :  { %v1511_v14 = vld [vmem:[%s2190_s1 + $0x124] sm:$0xf]  ;;  %v1175_v15 = vld [vmem:[%s2190_s1 + $0x130] sm:$0xf0]  ;;  %v1029_v16 = vld [vmem:[%s2190_s1] sm:$0xf]  ;;  %v1174_v21 = vor.u32 %v1513_v11, %v1173_v9  ;;  %v1050_v22 = vor.u32 %v1479_v12, %v1047_v13 }
  0x14   :  { %424 = vmatpush.bf16.msra.mxu0 %v1078_v56  ;;  %v1477_v18 = vld [vmem:[%s2190_s1 + $0xc] sm:$0xf0]  ;;  %v1157_v19 = vld [vmem:[%s2190_s1 + $0x100] sm:$0xf]  ;;  %v1475_v23 = vld [vmem:[%s2190_s1 + $0x4] sm:$0xf]  ;;  %v1178_v26 = vor.u32 %v1511_v14, %v1175_v15 }
  0x15   :  { %437 = vmatpush.bf16.msra.mxu1 %v1206_v57  ;;  %450 = vmatpush.bf16.msra.mxu2 %v1082_v58  ;;  %v1509_v20 = vld [vmem:[%s2190_s1 + $0x10c] sm:$0xf0]  ;;  %v1031_v24 = vld [vmem:[%s2190_s1 + $0x10] sm:$0xf0]  ;;  %v1507_v25 = vld [vmem:[%s2190_s1 + $0x104] sm:$0xf]  ;;  %v1030_v33 = vor.u32 %v1477_v18, %v1029_v16 }
  0x16   :  { %463 = vmatpush.bf16.msra.mxu3 %v1210_v62  ;;  %v1159_v27 = vld [vmem:[%s2190_s1 + $0x110] sm:$0xf0]  ;;  %v1149_v28 = vld [vmem:[%s2190_s1 + $0xe8] sm:$0xf]  ;;  %v1506_v29 = vld [vmem:[%s2190_s1 + $0xf4] sm:$0xf0]  ;;  %v1158_v36 = vor.u32 %v1509_v20, %v1157_v19  ;;  %v1034_v37 = vor.u32 %v1475_v23, %v1031_v24 }
  0x17   :  { %v1277_v30 = vld [vmem:[%s2190_s1 + $0x1e8] sm:$0xf]  ;;  %v1538_v31 = vld [vmem:[%s2190_s1 + $0x1f4] sm:$0xf0]  ;;  %v29_v32 = vld [vmem:[%s2191_s0] sm:$0x3]  ;;  %v1162_v40 = vor.u32 %v1507_v25, %v1159_v27  ;;  %v1150_v41 = vor.u32 %v1506_v29, %v1149_v28 }
  0x18   :  { %425 = vmatpush.bf16.msra.mxu0 %v1062_v4  ;;  %v1504_v34 = vld [vmem:[%s2190_s1 + $0xec] sm:$0xf]  ;;  %v1151_v35 = vld [vmem:[%s2190_s1 + $0xf8] sm:$0xf0]  ;;  %95 = vst [vmem:[#allocation1] ss:$9 sm:$0xff] %v29_v32  ;;  %v1278_v42 = vor.u32 %v1538_v31, %v1277_v30 }
  0x19   :  { %438 = vmatpush.bf16.msra.mxu1 %v1190_v5  ;;  %451 = vmatpush.bf16.msra.mxu2 %v1066_v6  ;;  %v1536_v38 = vld [vmem:[%s2190_s1 + $0x1ec] sm:$0xf]  ;;  %v1279_v39 = vld [vmem:[%s2190_s1 + $0x1f8] sm:$0xf0]  ;;  %v1154_v43 = vor.u32 %v1504_v34, %v1151_v35  ;;  %v1133_v44 = vld [vmem:[%s2190_s1 + $0xc8] sm:$0xf] }
  0x1a   :  { %464 = vmatpush.bf16.msra.mxu3 %v1194_v10  ;;  %v1502_v45 = vld [vmem:[%s2190_s1 + $0xd4] sm:$0xf0]  ;;  %v1261_v46 = vld [vmem:[%s2190_s1 + $0x1c8] sm:$0xf]  ;;  %v1282_v47 = vor.u32 %v1536_v38, %v1279_v39  ;;  %v1500_v49 = vld [vmem:[%s2190_s1 + $0xcc] sm:$0xf] }
  0x1b   :  { %v1534_v48 = vld [vmem:[%s2190_s1 + $0x1d4] sm:$0xf0]  ;;  %v1135_v50 = vld [vmem:[%s2190_s1 + $0xd8] sm:$0xf0]  ;;  %v1532_v51 = vld [vmem:[%s2190_s1 + $0x1cc] sm:$0xf]  ;;  %v1134_v53 = vor.u32 %v1502_v45, %v1133_v44 }
  0x1c   :  { %426 = vmatpush.bf16.msra.mxu0 %v1046_v17  ;;  %v1263_v52 = vld [vmem:[%s2190_s1 + $0x1d8] sm:$0xf0]  ;;  %v1117_v54 = vld [vmem:[%s2190_s1 + $0xa8] sm:$0xf]  ;;  %v1498_v55 = vld [vmem:[%s2190_s1 + $0xb4] sm:$0xf0]  ;;  %v1262_v56 = vor.u32 %v1534_v48, %v1261_v46  ;;  %v1138_v57 = vor.u32 %v1500_v49, %v1135_v50 }
  0x1d   :  { %439 = vmatpush.bf16.msra.mxu1 %v1174_v21  ;;  %452 = vmatpush.bf16.msra.mxu2 %v1050_v22  ;;  %v1245_v60 = vld [vmem:[%s2190_s1 + $0x1a8] sm:$0xf]  ;;  %v1266_v61 = vor.u32 %v1532_v51, %v1263_v52  ;;  %v1530_v62 = vld [vmem:[%s2190_s1 + $0x1b4] sm:$0xf0]  ;;  %v1496_v63 = vld [vmem:[%s2190_s1 + $0xac] sm:$0xf]  ;;  %v1118_v3 = vor.u32 %v1498_v55, %v1117_v54 }
  0x1e   :  { %465 = vmatpush.bf16.msra.mxu3 %v1178_v26  ;;  %v1119_v0 = vld [vmem:[%s2190_s1 + $0xb8] sm:$0xf0]  ;;  %v1528_v1 = vld [vmem:[%s2190_s1 + $0x1ac] sm:$0xf]  ;;  %v1246_v4 = vor.u32 %v1530_v62, %v1245_v60  ;;  %v1101_v6 = vld [vmem:[%s2190_s1 + $0x88] sm:$0xf] }
  0x1f   :  { %v1884_v58 = vld [vmem:[#allocation1] sm:$0xff]  ;;  %v1886_v59 = vld [vmem:[#allocation1 + $0x9] sm:$0xff]  ;;  %v1247_v2 = vld [vmem:[%s2190_s1 + $0x1b8] sm:$0xf0]  ;;  %v1122_v5 = vor.u32 %v1496_v63, %v1119_v0 }
  0x20   :  { %427 = vmatpush.bf16.msra.mxu0 %v1030_v33  ;;  %v1494_v7 = vld [vmem:[%s2190_s1 + $0x94] sm:$0xf0]  ;;  %v1229_v8 = vld [vmem:[%s2190_s1 + $0x188] sm:$0xf]  ;;  %v1250_v9 = vor.u32 %v1528_v1, %v1247_v2  ;;  %v1492_v11 = vld [vmem:[%s2190_s1 + $0x8c] sm:$0xf] }
  0x21   :  { %440 = vmatpush.bf16.msra.mxu1 %v1158_v36  ;;  %453 = vmatpush.bf16.msra.mxu2 %v1034_v37  ;;  %v1526_v10 = vld [vmem:[%s2190_s1 + $0x194] sm:$0xf0]  ;;  %v1103_v12 = vld [vmem:[%s2190_s1 + $0x98] sm:$0xf0]  ;;  %v1524_v13 = vld [vmem:[%s2190_s1 + $0x18c] sm:$0xf]  ;;  %v1102_v15 = vor.u32 %v1494_v7, %v1101_v6 }
  0x22   :  { %466 = vmatpush.bf16.msra.mxu3 %v1162_v40  ;;  %v1231_v14 = vld [vmem:[%s2190_s1 + $0x198] sm:$0xf0]  ;;  %v1230_v16 = vor.u32 %v1526_v10, %v1229_v8  ;;  %v1106_v17 = vor.u32 %v1492_v11, %v1103_v12  ;;  %v1085_v18 = vld [vmem:[%s2190_s1 + $0x68] sm:$0xf]  ;;  %v1490_v19 = vld [vmem:[%s2190_s1 + $0x74] sm:$0xf0] }
  0x23   :  { %428 = vmatmul.bf16.vlgmr.msra.gmra.mxu0 %v1884_v58  ;;  %v1213_v20 = vld [vmem:[%s2190_s1 + $0x168] sm:$0xf]  ;;  %v1234_v21 = vor.u32 %v1524_v13, %v1231_v14  ;;  %v1522_v22 = vld [vmem:[%s2190_s1 + $0x174] sm:$0xf0]  ;;  %v1488_v23 = vld [vmem:[%s2190_s1 + $0x6c] sm:$0xf]  ;;  %v1086_v27 = vor.u32 %v1490_v19, %v1085_v18 }
  0x24   :  { %472 = vmatpush.bf16.msrb.mxu0 %v1150_v41  ;;  %454 = vmatmul.bf16.vlgmr.msra.gmra.mxu2 %v1884_v58  ;;  %v1087_v24 = vld [vmem:[%s2190_s1 + $0x78] sm:$0xf0]  ;;  %v1520_v25 = vld [vmem:[%s2190_s1 + $0x16c] sm:$0xf]  ;;  %v1214_v28 = vor.u32 %v1522_v22, %v1213_v20  ;;  %v1069_v30 = vld [vmem:[%s2190_s1 + $0x48] sm:$0xf] }
  0x25   :  { %485 = vmatpush.bf16.msrb.mxu1 %v1278_v42  ;;  %498 = vmatpush.bf16.msrb.mxu2 %v1154_v43  ;;  %v1215_v26 = vld [vmem:[%s2190_s1 + $0x178] sm:$0xf0]  ;;  %v1090_v29 = vor.u32 %v1488_v23, %v1087_v24  ;;  %v1486_v31 = vld [vmem:[%s2190_s1 + $0x54] sm:$0xf0]  ;;  %v1197_v32 = vld [vmem:[%s2190_s1 + $0x148] sm:$0xf] }
  0x26   :  { %511 = vmatpush.bf16.msrb.mxu3 %v1282_v47  ;;  %441 = vmatmul.bf16.vlgmr.msra.gmra.mxu1 %v1886_v59  ;;  %v1218_v33 = vor.u32 %v1520_v25, %v1215_v26  ;;  %v1518_v34 = vld [vmem:[%s2190_s1 + $0x154] sm:$0xf0]  ;;  %v1484_v35 = vld [vmem:[%s2190_s1 + $0x4c] sm:$0xf]  ;;  %v1071_v36 = vld [vmem:[%s2190_s1 + $0x58] sm:$0xf0]  ;;  %v1070_v39 = vor.u32 %v1486_v31, %v1069_v30 }
  0x27   :  { %467 = vmatmul.bf16.vlgmr.msra.gmra.mxu3 %v1886_v59  ;;  %v1516_v37 = vld [vmem:[%s2190_s1 + $0x14c] sm:$0xf]  ;;  %v1199_v38 = vld [vmem:[%s2190_s1 + $0x158] sm:$0xf0]  ;;  %v1198_v40 = vor.u32 %v1518_v34, %v1197_v32  ;;  %v1074_v41 = vor.u32 %v1484_v35, %v1071_v36  ;;  %v1053_v42 = vld [vmem:[%s2190_s1 + $0x28] sm:$0xf] }
  0x28   :  { %473 = vmatpush.bf16.msrb.mxu0 %v1134_v53  ;;  %v1482_v43 = vld [vmem:[%s2190_s1 + $0x34] sm:$0xf0]  ;;  %v1181_v44 = vld [vmem:[%s2190_s1 + $0x128] sm:$0xf]  ;;  %v1202_v45 = vor.u32 %v1516_v37, %v1199_v38  ;;  %v1480_v47 = vld [vmem:[%s2190_s1 + $0x2c] sm:$0xf] }
  0x29   :  { %486 = vmatpush.bf16.msrb.mxu1 %v1262_v56  ;;  %499 = vmatpush.bf16.msrb.mxu2 %v1138_v57  ;;  %v1514_v46 = vld [vmem:[%s2190_s1 + $0x134] sm:$0xf0]  ;;  %v1055_v48 = vld [vmem:[%s2190_s1 + $0x38] sm:$0xf0]  ;;  %v1512_v49 = vld [vmem:[%s2190_s1 + $0x12c] sm:$0xf]  ;;  %v1054_v51 = vor.u32 %v1482_v43, %v1053_v42 }
  0x2a   :  { %512 = vmatpush.bf16.msrb.mxu3 %v1266_v61  ;;  %v1183_v50 = vld [vmem:[%s2190_s1 + $0x138] sm:$0xf0]  ;;  %v1182_v52 = vor.u32 %v1514_v46, %v1181_v44  ;;  %v1058_v53 = vor.u32 %v1480_v47, %v1055_v48  ;;  %v1037_v54 = vld [vmem:[%s2190_s1 + $0x8] sm:$0xf]  ;;  %v1478_v55 = vld [vmem:[%s2190_s1 + $0x14] sm:$0xf0] }
  0x2b   :  { %v1165_v56 = vld [vmem:[%s2190_s1 + $0x108] sm:$0xf]  ;;  %v1186_v57 = vor.u32 %v1512_v49, %v1183_v50  ;;  %v1510_v60 = vld [vmem:[%s2190_s1 + $0x114] sm:$0xf0]  ;;  %v1476_v61 = vld [vmem:[%s2190_s1 + $0xc] sm:$0xf]  ;;  %v1038_v1 = vor.u32 %v1478_v55, %v1037_v54 }
  0x2c   :  { %474 = vmatpush.bf16.msrb.mxu0 %v1118_v3  ;;  %v1039_v62 = vld [vmem:[%s2190_s1 + $0x18] sm:$0xf0]  ;;  %v1508_v63 = vld [vmem:[%s2190_s1 + $0x10c] sm:$0xf]  ;;  %v1166_v2 = vor.u32 %v1510_v60, %v1165_v56  ;;  %v1545_v8 = vld [vmem:[%s2192_s2 + $0x30] sm:$0xff] }
  0x2d   :  { %487 = vmatpush.bf16.msrb.mxu1 %v1246_v4  ;;  %500 = vmatpush.bf16.msrb.mxu2 %v1122_v5  ;;  %v1167_v0 = vld [vmem:[%s2190_s1 + $0x118] sm:$0xf0]  ;;  %v1042_v3 = vor.u32 %v1476_v61, %v1039_v62  ;;  %v1544_v10 = vld [vmem:[%s2192_s2 + $0x28] sm:$0xff]  ;;  %v1543_v12 = vld [vmem:[%s2192_s2 + $0x20] sm:$0xff] }
  0x2e   :  { %513 = vmatpush.bf16.msrb.mxu3 %v1250_v9  ;;  %v1170_v4 = vor.u32 %v1508_v63, %v1167_v0  ;;  %v1546_v5 = vld [vmem:[%s2192_s2 + $0x38] sm:$0xff]  ;;  %v1553_v9 = vld [vmem:[%s2192_s2 + $0x70] sm:$0xff]  ;;  %v1552_v11 = vld [vmem:[%s2192_s2 + $0x68] sm:$0xff] }
  0x2f   :  { %v1554_v6 = vld [vmem:[%s2192_s2 + $0x78] sm:$0xff]  ;;  %v1541_v14 = vld [vmem:[%s2192_s2 + $0x10] sm:$0xff]  ;;  %v1539_v19 = vld [vmem:[%s2192_s2] sm:$0xff] }
  0x30   :  { %475 = vmatpush.bf16.msrb.mxu0 %v1102_v15  ;;  %v1562_v7 = vld [vmem:[%s2192_s2 + $0xb8] sm:$0xff]  ;;  %v1549_v15 = vld [vmem:[%s2192_s2 + $0x50] sm:$0xff]  ;;  %v1560_v22 = vld [vmem:[%s2192_s2 + $0xa8] sm:$0xff] }
  0x31   :  { %488 = vmatpush.bf16.msrb.mxu1 %v1230_v16  ;;  %501 = vmatpush.bf16.msrb.mxu2 %v1106_v17  ;;  %v1550_v13 = vld [vmem:[%s2192_s2 + $0x58] sm:$0xff]  ;;  %v1540_v16 = vld [vmem:[%s2192_s2 + $0x8] sm:$0xff]  ;;  %v1561_v18 = vld [vmem:[%s2192_s2 + $0xb0] sm:$0xff] }
  0x32   :  { %514 = vmatpush.bf16.msrb.mxu3 %v1234_v21  ;;  %v1548_v17 = vld [vmem:[%s2192_s2 + $0x48] sm:$0xff]  ;;  %v1570_v20 = vld [vmem:[%s2192_s2 + $0xf8] sm:$0xff]  ;;  %v1547_v21 = vld [vmem:[%s2192_s2 + $0x40] sm:$0xff] }
  0x33   :  { %v1569_v23 = vld [vmem:[%s2192_s2 + $0xf0] sm:$0xff]  ;;  %v1559_v24 = vld [vmem:[%s2192_s2 + $0xa0] sm:$0xff]  ;;  %v1568_v25 = vld [vmem:[%s2192_s2 + $0xe8] sm:$0xff] }
  0x34   :  { %476 = vmatpush.bf16.msrb.mxu0 %v1086_v27  ;;  %v1558_v26 = vld [vmem:[%s2192_s2 + $0x98] sm:$0xff]  ;;  %v1567_v27 = vld [vmem:[%s2192_s2 + $0xe0] sm:$0xff]  ;;  %v1556_v30 = vld [vmem:[%s2192_s2 + $0x88] sm:$0xff] }
  0x35   :  { %489 = vmatpush.bf16.msrb.mxu1 %v1214_v28  ;;  %502 = vmatpush.bf16.msrb.mxu2 %v1090_v29  ;;  %v1557_v28 = vld [vmem:[%s2192_s2 + $0x90] sm:$0xff]  ;;  %v1566_v29 = vld [vmem:[%s2192_s2 + $0xd8] sm:$0xff]  ;;  %v1555_v34 = vld [vmem:[%s2192_s2 + $0x80] sm:$0xff] }
  0x36   :  { %515 = vmatpush.bf16.msrb.mxu3 %v1218_v33  ;;  %v1565_v31 = vld [vmem:[%s2192_s2 + $0xd0] sm:$0xff]  ;;  %v1564_v36 = vld [vmem:[%s2192_s2 + $0xc8] sm:$0xff]  ;;  %v1563_v43 = vld [vmem:[%s2192_s2 + $0xc0] sm:$0xff] }
  0x38   :  { %477 = vmatpush.bf16.msrb.mxu0 %v1070_v39 }
  0x39   :  { %490 = vmatpush.bf16.msrb.mxu1 %v1198_v40  ;;  %503 = vmatpush.bf16.msrb.mxu2 %v1074_v41 }
  0x3a   :  { %516 = vmatpush.bf16.msrb.mxu3 %v1202_v45 }
  0x3c   :  { %478 = vmatpush.bf16.msrb.mxu0 %v1054_v51 }
  0x3d   :  { %491 = vmatpush.bf16.msrb.mxu1 %v1182_v52  ;;  %504 = vmatpush.bf16.msrb.mxu2 %v1058_v53 }
  0x3e   :  { %517 = vmatpush.bf16.msrb.mxu3 %v1186_v57 }
  0x40   :  { %479 = vmatpush.bf16.msrb.mxu0 %v1038_v1 }
  0x41   :  { %492 = vmatpush.bf16.msrb.mxu1 %v1166_v2  ;;  %505 = vmatpush.bf16.msrb.mxu2 %v1042_v3 }
  0x42   :  { %518 = vmatpush.bf16.msrb.mxu3 %v1170_v4 }
  0x43   :  { %480 = vmatmul.bf16.vlgmr.msrb.gmra.mxu0 %v1884_v58 }
  0x44   :  { %800 = vmatpush.bf16.msra.mxu0 %v1546_v5  ;;  %493 = vmatmul.bf16.vlgmr.msrb.gmra.mxu1 %v1886_v59  ;;  %v1578_v5 = vld [vmem:[%s2195_s4 + $0x38] sm:$0xff] }
  0x45   :  { %813 = vmatpush.bf16.msra.mxu1 %v1554_v6  ;;  %506 = vmatmul.bf16.vlgmr.msrb.gmra.mxu2 %v1884_v58  ;;  %v1551_v58 = vld [vmem:[%s2192_s2 + $0x60] sm:$0xff]  ;;  %v1577_v6 = vld [vmem:[%s2195_s4 + $0x30] sm:$0xff] }
  0x46   :  { %519 = vmatmul.bf16.vlgmr.msrb.gmra.mxu3 %v1886_v59  ;;  %826 = vmatpush.bf16.msra.mxu2 %v1562_v7  ;;  %v1542_v59 = vld [vmem:[%s2192_s2 + $0x18] sm:$0xff]  ;;  %v1576_v7 = vld [vmem:[%s2195_s4 + $0x28] sm:$0xff] }
  0x47   :  { %839 = vmatpush.bf16.msra.mxu3 %v1570_v20  ;;  %v1582_v20 = vld [vmem:[%s2196_s6 + $0x18] sm:$0xff] }
  0x48   :  { %801 = vmatpush.bf16.msra.mxu0 %v1545_v8  ;;  %v1575_v8 = vld [vmem:[%s2195_s4 + $0x20] sm:$0xff] }
  0x49   :  { %814 = vmatpush.bf16.msra.mxu1 %v1553_v9  ;;  %v1574_v9 = vld [vmem:[%s2195_s4 + $0x18] sm:$0xff] }
  0x4a   :  { %827 = vmatpush.bf16.msra.mxu2 %v1561_v18  ;;  %v1583_v18 = vld [vmem:[%s2196_s6 + $0x20] sm:$0xff] }
  0x4b   :  { %840 = vmatpush.bf16.msra.mxu3 %v1569_v23  ;;  %v1581_v23 = vld [vmem:[%s2196_s6 + $0x10] sm:$0xff] }
  0x4c   :  { %802 = vmatpush.bf16.msra.mxu0 %v1544_v10 }
  0x4d   :  { %815 = vmatpush.bf16.msra.mxu1 %v1552_v11  ;;  %v1573_v11 = vld [vmem:[%s2195_s4 + $0x10] sm:$0xff] }
  0x4e   :  { %828 = vmatpush.bf16.msra.mxu2 %v1560_v22 }
  0x4f   :  { %841 = vmatpush.bf16.msra.mxu3 %v1568_v25 }
  0x50   :  { %803 = vmatpush.bf16.msra.mxu0 %v1543_v12 }
  0x51   :  { %816 = vmatpush.bf16.msra.mxu1 %v1551_v58 }
  0x52   :  { %829 = vmatpush.bf16.msra.mxu2 %v1559_v24 }
  0x53   :  { %842 = vmatpush.bf16.msra.mxu3 %v1567_v27 }
  0x54   :  { %804 = vmatpush.bf16.msra.mxu0 %v1542_v59  ;;  %v1572_v59 = vld [vmem:[%s2195_s4 + $0x8] sm:$0xff] }
  0x55   :  { %817 = vmatpush.bf16.msra.mxu1 %v1550_v13  ;;  %v1571_v13 = vld [vmem:[%s2195_s4] sm:$0xff] }
  0x56   :  { %830 = vmatpush.bf16.msra.mxu2 %v1558_v26 }
  0x57   :  { %843 = vmatpush.bf16.msra.mxu3 %v1566_v29 }
  0x58   :  { %805 = vmatpush.bf16.msra.mxu0 %v1541_v14 }
  0x59   :  { %818 = vmatpush.bf16.msra.mxu1 %v1549_v15  ;;  %v1586_v15 = vld [vmem:[%s2196_s6 + $0x38] sm:$0xff] }
  0x5a   :  { %831 = vmatpush.bf16.msra.mxu2 %v1557_v28 }
  0x5b   :  { %844 = vmatpush.bf16.msra.mxu3 %v1565_v31 }
  0x5c   :  { %806 = vmatpush.bf16.msra.mxu0 %v1540_v16  ;;  %v1585_v16 = vld [vmem:[%s2196_s6 + $0x30] sm:$0xff] }
  0x5d   :  { %819 = vmatpush.bf16.msra.mxu1 %v1548_v17  ;;  %v1584_v17 = vld [vmem:[%s2196_s6 + $0x28] sm:$0xff] }
  0x5e   :  { %832 = vmatpush.bf16.msra.mxu2 %v1556_v30 }
  0x5f   :  { %845 = vmatpush.bf16.msra.mxu3 %v1564_v36 }
  0x60   :  { %807 = vmatpush.bf16.msra.mxu0 %v1539_v19  ;;  %v1587_v19 = vld [vmem:[%s2193_s3] ss:$0 sm:$0xff] }
  0x61   :  { %820 = vmatpush.bf16.msra.mxu1 %v1547_v21 }
  0x62   :  { %833 = vmatpush.bf16.msra.mxu2 %v1555_v34  ;;  %v1579_v34 = vld [vmem:[%s2196_s6] sm:$0xff] }
  0x63   :  { %846 = vmatpush.bf16.msra.mxu3 %v1563_v43 }
  0x64   :  { %924 = vmatpush.bf16.msrb.mxu0 %v1578_v5 }
  0x65   :  { %1009 = vmatpush.bf16.msrb.mxu1 %v1586_v15 }
  0x68   :  { %925 = vmatpush.bf16.msrb.mxu0 %v1577_v6 }
  0x69   :  { %1010 = vmatpush.bf16.msrb.mxu1 %v1585_v16 }
  0x6c   :  { %926 = vmatpush.bf16.msrb.mxu0 %v1576_v7 }
  0x6d   :  { %1011 = vmatpush.bf16.msrb.mxu1 %v1584_v17 }
  0x70   :  { %927 = vmatpush.bf16.msrb.mxu0 %v1575_v8 }
  0x71   :  { %1012 = vmatpush.bf16.msrb.mxu1 %v1583_v18 }
  0x74   :  { %928 = vmatpush.bf16.msrb.mxu0 %v1574_v9 }
  0x75   :  { %1013 = vmatpush.bf16.msrb.mxu1 %v1582_v20 }
  0x78   :  { %929 = vmatpush.bf16.msrb.mxu0 %v1573_v11 }
  0x79   :  { %1014 = vmatpush.bf16.msrb.mxu1 %v1581_v23 }
  0x7c   :  { %930 = vmatpush.bf16.msrb.mxu0 %v1572_v59 }
  0x80   :  { %931 = vmatpush.bf16.msrb.mxu0 %v1571_v13 }
  0xa0   :  { %v429_v32 = vpop.f32.mrf.mxu0 }
  0xa3   :  { %v442_v33 = vpop.f32.mrf.mxu1 }
  0xa4   :  { %v443_v35 = vadd.f32 %v442_v33, %v429_v32  ;;  %v1580_v33 = vld [vmem:[%s2196_s6 + $0x8] sm:$0xff] }
  0xa5   :  { %1015 = vmatpush.bf16.msrb.mxu1 %v1580_v33 }
  0xa6   :  { %vm524_vm0 = vcmp.ge.f32.partialorder %v443_v35, 0.0  ;;  %v528_v37 = vmul.f32 0.01, %v443_v35 }
  0xa7   :  { %v455_v38 = vpop.f32.mrf.mxu2 }
  0xa8   :  { %v532_v39 = vsel %vm524_vm0, %v443_v35, %v528_v37  ;;  %v431_v44 = vpop.f32.mrf.mxu0  ;;  %v1588_v35 = vld [vmem:[%s2194_s5] ss:$0 sm:$0xff] }
  0xa9   :  { %v536_v41 = vpack.c.bf16 %v532_v39, %v532_v39  ;;  %1016 = vmatpush.bf16.msrb.mxu1 %v1579_v34 }
  0xaa   :  { %v468_v40 = vpop.f32.mrf.mxu3 }
  0xab   :  { %v469_v42 = vadd.f32 %v468_v40, %v455_v38  ;;  %808 = vmatmul.bf16.vlgmr.msra.gmra.mxu0 %v536_v41  ;;  %v444_v46 = vpop.f32.mrf.mxu1 }
  0xad   :  { %vm525_vm1 = vcmp.ge.f32.partialorder %v469_v42, 0.0  ;;  %v529_v45 = vmul.f32 0.01, %v469_v42 }
  0xaf   :  { %v533_v47 = vsel %vm525_vm1, %v469_v42, %v529_v45  ;;  %v457_v49 = vpop.f32.mrf.mxu2  ;;  %v1589_v42 = vld [vmem:[%s2197_s7] ss:$0 sm:$0xff] }
  0xb0   :  { %v537_v48 = vpack.c.bf16 %v533_v47, %v533_v47 }
  0xb2   :  { %821 = vmatmul.bf16.vlgmr.msra.gmra.mxu1 %v537_v48  ;;  %v470_v50 = vpop.f32.mrf.mxu3 }
  0xc0   :  { %v481_v51 = vpop.f32.mrf.mxu0 }
  0xc1   :  { %v494_v52 = vpop.f32.mrf.mxu1 }
  0xc2   :  { %v495_v53 = vadd.f32 %v494_v52, %v481_v51 }
  0xc4   :  { %vm526_vm2 = vcmp.ge.f32.partialorder %v495_v53, 0.0  ;;  %v530_v54 = vmul.f32 0.01, %v495_v53 }
  0xc6   :  { %v534_v55 = vsel %vm526_vm2, %v495_v53, %v530_v54 }
  0xc7   :  { %v538_v56 = vpack.c.bf16 %v534_v55, %v534_v55 }
  0xc8   :  { %v507_v57 = vpop.f32.mrf.mxu2  ;;  %v483_v61 = vpop.f32.mrf.mxu0 }
  0xc9   :  { %v520_v60 = vpop.f32.mrf.mxu3  ;;  %v496_v63 = vpop.f32.mrf.mxu1  ;;  %834 = vmatmul.bf16.vlgmr.msra.gmra.mxu2 %v538_v56 }
  0xca   :  { %v521_v62 = vadd.f32 %v520_v60, %v507_v57 }
  0xcc   :  { %vm527_vm3 = vcmp.ge.f32.partialorder %v521_v62, 0.0  ;;  %v531_v0 = vmul.f32 0.01, %v521_v62 }
  0xce   :  { %v535_v1 = vsel %vm527_vm3, %v521_v62, %v531_v0 }
  0xcf   :  { %v539_v2 = vpack.c.bf16 %v535_v1, %v535_v1 }
  0xd0   :  { %v509_v3 = vpop.f32.mrf.mxu2 }
  0xd1   :  { %v522_v4 = vpop.f32.mrf.mxu3  ;;  %847 = vmatmul.bf16.vlgmr.msra.gmra.mxu3 %v539_v2 }
 0x128   :  { %v809_v10 = vpop.f32.mrf.mxu0 }
 0x129   :  { %v810_v21 = vadd.f32 %v1587_v19, %v809_v10 }
 0x12f   :  { %v822_v12 = vpop.f32.mrf.mxu1 }
 0x130   :  { %v811_v58 = vpop.f32.mrf.mxu0  ;;  %v823_v24 = vadd.f32 %v822_v12, %v810_v21 }
 0x137   :  { %v824_v14 = vpop.f32.mrf.mxu1 }
 0x14c   :  { %v835_v22 = vpop.f32.mrf.mxu2 }
 0x14d   :  { %v836_v25 = vadd.f32 %v835_v22, %v823_v24 }
 0x154   :  { %v848_v26 = vpop.f32.mrf.mxu3  ;;  %v837_v28 = vpop.f32.mrf.mxu2 }
 0x155   :  { %v849_v27 = vadd.f32 %v848_v26, %v836_v25 }
 0x157   :  { %vm852_vm4 = vcmp.ge.f32.partialorder %v849_v27, 0.0  ;;  %v853_v29 = vmul.f32 0.01, %v849_v27 }
 0x159   :  { %v854_v30 = vsel %vm852_vm4, %v849_v27, %v853_v29 }
 0x15a   :  { %v855_v31 = vpack.c.bf16 %v854_v30, %v854_v30 }
 0x15c   :  { %v850_v32 = vpop.f32.mrf.mxu3  ;;  %932 = vmatmul.bf16.vlgmr.msrb.gmra.mxu0 %v855_v31 }
 0x1d9   :  { %v933_v36 = vpop.f32.mrf.mxu0 }
 0x1da   :  { %v934_v37 = vadd.f32 %v1588_v35, %v933_v36 }
 0x1dc   :  { %vm937_vm5 = vcmp.ge.f32.partialorder %v934_v37, 0.0  ;;  %v938_v38 = vmul.f32 0.01, %v934_v37 }
 0x1de   :  { %v939_v39 = vsel %vm937_vm5, %v934_v37, %v938_v38 }
 0x1df   :  { %v940_v40 = vpack.c.bf16 %v939_v39, %v939_v39 }
 0x1e1   :  { %v935_v41 = vpop.f32.mrf.mxu0  ;;  %1017 = vmatmul.bf16.vlgmr.msrb.gmra.mxu1 %v940_v40 }
 0x25e   :  { %v1018_v43 = vpop.f32.mrf.mxu1 }
 0x25f   :  { %v1019_v44 = vadd.f32 %v1589_v42, %v1018_v43 }
 0x261   :  { %1022 = vst [vmem:[%s2198_s8] sm:$0x3] %v1019_v44 }
 0x266   :  { %v1020_v45 = vpop.f32.mrf.mxu1 }

</bundles_post_ra>
